<compile_context>
chip_gen: v5e
topology: v5e:2x2
jax: 0.10.0
libtpu: 0.0.40
codegen_flags: <defaults>
</compile_context>

<pallas_src>
import functools

import jax
import jax.numpy as jnp
from jax import lax
from jax.experimental import pallas as pl
from jax.experimental.pallas import tpu as pltpu

EPS = 1e-5  # PyTorch BatchNorm2d default eps


# ---------------------------------------------------------------------------
# Pass 1: fused 3x3 conv (conv1*conv2*conv3 + identity shortcut pre-folded in
#         the wrapper) + one-pass per-channel sum / sum-of-squares for BN.
# Grid: one step per batch image ("parallel" -> megacore shardable on v7x).
# ---------------------------------------------------------------------------
def _fused_conv_stats_kernel(xc_ref, wf_ref, bias_ref, y_ref, stats_ref, *,
                             width):
    # xc_ref   : (1, 3, Cin, (H+2)*W) column-shifted, spatially-flattened input
    # wf_ref   : (Cout, 9*Cin)        fused 3x3 weights (tap-major, cin fast)
    # bias_ref : (Cout, H*W)          exact per-position affine bias
    # y_ref    : (Cout, H*W)          pre-BN activations (channel-major)
    # stats_ref: (1, Cout, 2)         per-image [sum, sumsq] per channel
    cout, hw = y_ref.shape

    xc = xc_ref[0]                                   # (3, Cin, (H+2)*W)

    # im2col (transposed): the dj column shift was materialized by the
    # wrapper; the di row shift is a contiguous lane slice of the flattened
    # (H+2, W) plane.  9 static slices + one concat -> ONE wide-K matmul.
    rows = []
    for di in range(3):
        for dj in range(3):
            rows.append(xc[dj, :, di * width:di * width + hw])   # (Cin, H*W)
    patch = jnp.concatenate(rows, axis=0)            # (9*Cin, H*W)

    y = jnp.dot(wf_ref[...], patch,
                preferred_element_type=jnp.float32)  # (Cout, H*W)
    y = y + bias_ref[...]                            # shortcut folded into the
                                                     # center tap of wf.

    # one-pass BatchNorm partial statistics (f32 accumulators).
    s = jnp.sum(y, axis=1, keepdims=True)            # (Cout, 1)
    ss = jnp.sum(y * y, axis=1, keepdims=True)       # (Cout, 1)
    stats_ref[0] = jnp.concatenate([s, ss], axis=1)  # (Cout, 2)

    y_ref[...] = y                                   # lane-dense store


# ---------------------------------------------------------------------------
# Pass 2: finalize global BN statistics, normalize, scale/shift, ReLU.
# Grid: one step per batch image on the channel-major (N*Cout, H*W) slab.
# ---------------------------------------------------------------------------
def _bn_relu_kernel(y_ref, stats_ref, gamma_ref, beta_ref, o_ref, *, nhw):
    tot = jnp.sum(stats_ref[...], axis=0)            # (Cout, 2) global sums
    mean = tot[:, 0:1] * (1.0 / nhw)                 # (Cout, 1)
    # NOTE: E[y^2] - mean^2 in f32 is fine at these sizes; switch to Welford /
    # compensated sums if N*H*W grows very large.
    var = tot[:, 1:2] * (1.0 / nhw) - mean * mean
    inv = lax.rsqrt(var + EPS)                       # EUP slot, ~free

    scale = gamma_ref[...] * inv                     # (Cout, 1)
    shift = beta_ref[...] - mean * scale             # (Cout, 1)
    o_ref[...] = jnp.maximum(y_ref[...] * scale + shift, 0.0)


def resblock_forward(x_nchw, params):
    """x_nchw: (N, Cin, H, W) float32 -> (N, planes, H, W) float32 (stride=1)."""
    w1, b1, w2, b2, w3, b3, gamma, beta = params
    N, Cin, H, W = x_nchw.shape
    Cout = w3.shape[1]
    assert Cin == Cout, "stride=1 identity-shortcut path needs inplanes == planes"

    # ---- one-time parameter preprocessing: fuse the three linear convs -----
    # Wf[di,dj] = w1 @ w2[di,dj] @ w3 ; identity shortcut folded into center tap.
    wf = jnp.einsum('ac,ijcd,de->ijae', w1, w2, w3)            # (3,3,Cin,Cout)
    wf = wf.at[1, 1].add(jnp.eye(Cin, dtype=wf.dtype))
    wf_t = jnp.transpose(wf, (3, 0, 1, 2)).reshape(Cout, 9 * Cin)
    wf_t = wf_t.astype(jnp.float32)

    # Exact per-position bias = the affine pipeline evaluated at x == 0.
    # b1 reaches the output only through conv2 taps whose input pixel lies
    # inside the image (conv2's zero padding pads h1), hence the border masks.
    t = jnp.einsum('c,ijcd,de->ije', b1.reshape(-1), w2, w3)   # (3,3,Cout)
    vh = jnp.ones((H, 3), jnp.float32).at[0, 0].set(0.0).at[H - 1, 2].set(0.0)
    vw = jnp.ones((W, 3), jnp.float32).at[0, 0].set(0.0).at[W - 1, 2].set(0.0)
    bias_b1 = jnp.einsum('hi,wj,ije->ehw', vh, vw, t)          # (Cout,H,W)
    bias_const = b2.reshape(-1) @ w3 + b3.reshape(-1)          # (Cout,)
    bias_t = (bias_b1 + bias_const[:, None, None]).reshape(Cout, H * W)
    bias_t = bias_t.astype(jnp.float32)

    # ---- layout: 1-pixel zero pad + the three dj column shifts, flattened ---
    # x_cols[n, dj, c, h'*W + w] = pad(x)[n, c, h', w + dj]
    x_pad = jnp.pad(x_nchw, ((0, 0), (0, 0), (1, 1), (1, 1)))
    x_cols = jnp.stack([x_pad[..., dj:dj + W] for dj in range(3)], axis=1)
    x_cols = x_cols.reshape(N, 3, Cin, (H + 2) * W).astype(jnp.float32)

    gamma_c = gamma.reshape(Cout, 1).astype(jnp.float32)
    beta_c = beta.reshape(Cout, 1).astype(jnp.float32)

    # ---- pass 1: fused conv + BN partial statistics -------------------------
    y2, stats = pl.pallas_call(
        functools.partial(_fused_conv_stats_kernel, width=W),
        out_shape=(jax.ShapeDtypeStruct((N * Cout, H * W), jnp.float32),
                   jax.ShapeDtypeStruct((N, Cout, 2), jnp.float32)),
        grid=(N,),
        in_specs=[
            pl.BlockSpec((1, 3, Cin, (H + 2) * W), lambda n: (n, 0, 0, 0)),
            pl.BlockSpec((Cout, 9 * Cin), lambda n: (0, 0)),
            pl.BlockSpec((Cout, H * W), lambda n: (0, 0)),
        ],
        out_specs=(pl.BlockSpec((Cout, H * W), lambda n: (n, 0)),
                   pl.BlockSpec((1, Cout, 2), lambda n: (n, 0, 0))),
        compiler_params=pltpu.CompilerParams(
            dimension_semantics=("parallel",)),
    )(x_cols, wf_t, bias_t)

    # ---- pass 2: global BN finalize + gamma/beta + ReLU (lane-dense) --------
    out2 = pl.pallas_call(
        functools.partial(_bn_relu_kernel, nhw=float(N * H * W)),
        out_shape=jax.ShapeDtypeStruct((N * Cout, H * W), jnp.float32),
        grid=(N,),
        in_specs=[
            pl.BlockSpec((Cout, H * W), lambda n: (n, 0)),
            pl.BlockSpec((N, Cout, 2), lambda n: (0, 0, 0)),
            pl.BlockSpec((Cout, 1), lambda n: (0, 0)),
            pl.BlockSpec((Cout, 1), lambda n: (0, 0)),
        ],
        out_specs=pl.BlockSpec((Cout, H * W), lambda n: (n, 0)),
        compiler_params=pltpu.CompilerParams(
            dimension_semantics=("parallel",)),
    )(y2, stats, gamma_c, beta_c)

    # channel-major slab -> NCHW is a pure reshape (no transpose needed).
    return out2.reshape(N, Cout, H, W)


def ref_forward(x_nchw, params):
    """Pure-JAX reference of the same forward pass (unfused, for correctness)."""
    w1, b1, w2, b2, w3, b3, gamma, beta = params
    Cin, Cmid = w1.shape
    Cout = w3.shape[1]
    dn = ('NHWC', 'HWIO', 'NHWC')
    x = jnp.transpose(x_nchw, (0, 2, 3, 1))

    h1 = lax.conv_general_dilated(x, w1.reshape(1, 1, Cin, Cmid), (1, 1),
                                  'VALID', dimension_numbers=dn)
    h1 = h1 + b1.reshape(1, 1, 1, -1)
    h2 = lax.conv_general_dilated(h1, w2, (1, 1), 'SAME',
                                  dimension_numbers=dn)
    h2 = h2 + b2.reshape(1, 1, 1, -1)
    h3 = lax.conv_general_dilated(h2, w3.reshape(1, 1, Cmid, Cout), (1, 1),
                                  'VALID', dimension_numbers=dn)
    h3 = h3 + b3.reshape(1, 1, 1, -1)
    y = h3 + x
    mean = jnp.mean(y, axis=(0, 1, 2), keepdims=True)
    var = jnp.mean((y - mean) ** 2, axis=(0, 1, 2), keepdims=True)
    out = (y - mean) * lax.rsqrt(var + EPS)
    out = jnp.maximum(out * gamma.reshape(1, 1, 1, -1)
                      + beta.reshape(1, 1, 1, -1), 0.0)
    return jnp.transpose(out, (0, 3, 1, 2))


if __name__ == "__main__":
    # ResBlock(inplanes=16, planes=16, stride=1, kernel_size=3)
    N, C, H, W = 2, 16, 16, 16
    planes = C
    Cmid = planes // 2

    key = jax.random.PRNGKey(0)
    ks = jax.random.split(key, 9)

    x = jax.random.normal(ks[0], (N, C, H, W), jnp.float32)

    # Deterministic synthetic parameters (stored already transposed to the
    # kernel-friendly [Cin, Cout] / [kh, kw, Cin, Cout] layouts).
    w1 = 0.1 * jax.random.normal(ks[1], (C, Cmid), jnp.float32)           # conv1
    b1 = 0.1 * jax.random.normal(ks[2], (1, Cmid), jnp.float32)
    w2 = 0.1 * jax.random.normal(ks[3], (3, 3, Cmid, Cmid), jnp.float32)  # conv2
    b2 = 0.1 * jax.random.normal(ks[4], (1, Cmid), jnp.float32)
    w3 = 0.1 * jax.random.normal(ks[5], (Cmid, planes), jnp.float32)      # conv3
    b3 = 0.1 * jax.random.normal(ks[6], (1, planes), jnp.float32)
    gamma = 1.0 + 0.1 * jax.random.normal(ks[7], (1, planes), jnp.float32)  # BN
    beta = 0.1 * jax.random.normal(ks[8], (1, planes), jnp.float32)
    params = (w1, b1, w2, b2, w3, b3, gamma, beta)

    out = resblock_forward(x, params)
    out = jax.block_until_ready(out)

    ref = ref_forward(x, params)
    assert out.shape == (N, planes, H, W), out.shape
    assert jnp.allclose(out, ref, atol=1e-3, rtol=1e-3), \
        float(jnp.max(jnp.abs(out - ref)))

    print("KERNEL_OK")
</pallas_src>

<mosaic_0001>
module attributes {stable_mosaic.version = 11 : i64} {
  func.func @_fused_conv_stats_kernel(%arg0: i32, %arg1: memref<1x3x16x288xf32, #tpu.memory_space<vmem>>, %arg2: memref<16x144xf32, #tpu.memory_space<vmem>>, %arg3: memref<16x256xf32, #tpu.memory_space<vmem>>, %arg4: memref<16x256xf32, #tpu.memory_space<vmem>>, %arg5: memref<1x16x2xf32, #tpu.memory_space<vmem>>) attributes {dimension_semantics = [#tpu.dimension_semantics<parallel>], iteration_bounds = array<i64: 2>, scalar_prefetch = 0 : i64, scratch_operands = 0 : i64, tpu.core_type = #tpu.core_type<tc>, window_params = [{transform_indices = @transform_0, window_bounds = array<i64: 1, 3, 16, 288>}, {pipeline_mode = #tpu.pipeline_mode<synchronous>, transform_indices = @transform_1, window_bounds = array<i64: 16, 144>}, {pipeline_mode = #tpu.pipeline_mode<synchronous>, transform_indices = @transform_2, window_bounds = array<i64: 16, 256>}, {transform_indices = @transform_3, window_bounds = array<i64: 16, 256>}, {transform_indices = @transform_4, window_bounds = array<i64: 1, 16, 2>}]} {
    %c0 = arith.constant 0 : index
    %c0_0 = arith.constant 0 : index
    %c0_1 = arith.constant 0 : index
    %c0_2 = arith.constant 0 : index
    %0 = vector.load %arg1[%c0, %c0_0, %c0_1, %c0_2] : memref<1x3x16x288xf32, #tpu.memory_space<vmem>>, vector<1x3x16x288xf32>
    %1 = vector.shape_cast %0 : vector<1x3x16x288xf32> to vector<3x16x288xf32>
    %2 = vector.extract_strided_slice %1 {offsets = [0, 0, 0], sizes = [1, 16, 256], strides = [1, 1, 1]} : vector<3x16x288xf32> to vector<1x16x256xf32>
    %3 = vector.shape_cast %2 : vector<1x16x256xf32> to vector<16x256xf32>
    %4 = vector.extract_strided_slice %1 {offsets = [1, 0, 0], sizes = [1, 16, 256], strides = [1, 1, 1]} : vector<3x16x288xf32> to vector<1x16x256xf32>
    %5 = vector.shape_cast %4 : vector<1x16x256xf32> to vector<16x256xf32>
    %6 = vector.extract_strided_slice %1 {offsets = [2, 0, 0], sizes = [1, 16, 256], strides = [1, 1, 1]} : vector<3x16x288xf32> to vector<1x16x256xf32>
    %7 = vector.shape_cast %6 : vector<1x16x256xf32> to vector<16x256xf32>
    %8 = vector.extract_strided_slice %1 {offsets = [0, 0, 16], sizes = [1, 16, 256], strides = [1, 1, 1]} : vector<3x16x288xf32> to vector<1x16x256xf32>
    %9 = vector.shape_cast %8 : vector<1x16x256xf32> to vector<16x256xf32>
    %10 = vector.extract_strided_slice %1 {offsets = [1, 0, 16], sizes = [1, 16, 256], strides = [1, 1, 1]} : vector<3x16x288xf32> to vector<1x16x256xf32>
    %11 = vector.shape_cast %10 : vector<1x16x256xf32> to vector<16x256xf32>
    %12 = vector.extract_strided_slice %1 {offsets = [2, 0, 16], sizes = [1, 16, 256], strides = [1, 1, 1]} : vector<3x16x288xf32> to vector<1x16x256xf32>
    %13 = vector.shape_cast %12 : vector<1x16x256xf32> to vector<16x256xf32>
    %14 = vector.extract_strided_slice %1 {offsets = [0, 0, 32], sizes = [1, 16, 256], strides = [1, 1, 1]} : vector<3x16x288xf32> to vector<1x16x256xf32>
    %15 = vector.shape_cast %14 : vector<1x16x256xf32> to vector<16x256xf32>
    %16 = vector.extract_strided_slice %1 {offsets = [1, 0, 32], sizes = [1, 16, 256], strides = [1, 1, 1]} : vector<3x16x288xf32> to vector<1x16x256xf32>
    %17 = vector.shape_cast %16 : vector<1x16x256xf32> to vector<16x256xf32>
    %18 = vector.extract_strided_slice %1 {offsets = [2, 0, 32], sizes = [1, 16, 256], strides = [1, 1, 1]} : vector<3x16x288xf32> to vector<1x16x256xf32>
    %19 = vector.shape_cast %18 : vector<1x16x256xf32> to vector<16x256xf32>
    %20 = tpu.concatenate %3, %5, %7, %9, %11, %13, %15, %17, %19 in 0 : vector<16x256xf32>, vector<16x256xf32>, vector<16x256xf32>, vector<16x256xf32>, vector<16x256xf32>, vector<16x256xf32>, vector<16x256xf32>, vector<16x256xf32>, vector<16x256xf32> -> vector<144x256xf32>
    %c0_3 = arith.constant 0 : index
    %c0_4 = arith.constant 0 : index
    %21 = vector.load %arg2[%c0_3, %c0_4] : memref<16x144xf32, #tpu.memory_space<vmem>>, vector<16x144xf32>
    %cst = arith.constant dense<0.000000e+00> : vector<16x256xf32>
    %22 = tpu.matmul %21, %20, %cst {dimension_numbers = #tpu.dot_dimension_numbers<[1], [0], [0], [1], [0, 0, 1, 1], [], []>} : vector<16x144xf32>, vector<144x256xf32>, vector<16x256xf32> -> vector<16x256xf32>
    %c0_5 = arith.constant 0 : index
    %c0_6 = arith.constant 0 : index
    %23 = vector.load %arg3[%c0_5, %c0_6] : memref<16x256xf32, #tpu.memory_space<vmem>>, vector<16x256xf32>
    %24 = arith.addf %22, %23 : vector<16x256xf32>
    %cst_7 = arith.constant dense<0.000000e+00> : vector<16xf32>
    %25 = vector.multi_reduction <add>, %24, %cst_7 [1] : vector<16x256xf32> to vector<16xf32>
    %26 = vector.shape_cast %25 : vector<16xf32> to vector<16x1xf32>
    %27 = arith.mulf %24, %24 : vector<16x256xf32>
    %cst_8 = arith.constant dense<0.000000e+00> : vector<16xf32>
    %28 = vector.multi_reduction <add>, %27, %cst_8 [1] : vector<16x256xf32> to vector<16xf32>
    %29 = vector.shape_cast %28 : vector<16xf32> to vector<16x1xf32>
    %30 = tpu.concatenate %26, %29 in 1 : vector<16x1xf32>, vector<16x1xf32> -> vector<16x2xf32>
    %c0_9 = arith.constant 0 : index
    %c0_10 = arith.constant 0 : index
    %c0_11 = arith.constant 0 : index
    %31 = vector.load %arg5[%c0_9, %c0_10, %c0_11] : memref<1x16x2xf32, #tpu.memory_space<vmem>>, vector<1x16x2xf32>
    %32 = vector.shape_cast %31 : vector<1x16x2xf32> to vector<16x2xf32>
    %33 = vector.shape_cast %30 : vector<16x2xf32> to vector<1x16x2xf32>
    tpu.vector_store %arg5[%c0_9, %c0_10, %c0_11], %33 {strides = array<i32>} : memref<1x16x2xf32, #tpu.memory_space<vmem>>, vector<1x16x2xf32>,
    %c0_12 = arith.constant 0 : index
    %c0_13 = arith.constant 0 : index
    %34 = vector.load %arg4[%c0_12, %c0_13] : memref<16x256xf32, #tpu.memory_space<vmem>>, vector<16x256xf32>
    tpu.vector_store %arg4[%c0_12, %c0_13], %24 {strides = array<i32>} : memref<16x256xf32, #tpu.memory_space<vmem>>, vector<16x256xf32>,
    return
  }
  func.func @transform_0(%arg0: i32) -> (i32, i32, i32, i32) {
    %c0_i32 = arith.constant 0 : i32
    %c0_i32_0 = arith.constant 0 : i32
    %c0_i32_1 = arith.constant 0 : i32
    %c0_i32_2 = arith.constant 0 : i32
    return %arg0, %c0_i32, %c0_i32_0, %c0_i32_1 : i32, i32, i32, i32
  }
  func.func @transform_1(%arg0: i32) -> (i32, i32) {
    %c0_i32 = arith.constant 0 : i32
    %c0_i32_0 = arith.constant 0 : i32
    %c0_i32_1 = arith.constant 0 : i32
    return %c0_i32, %c0_i32_0 : i32, i32
  }
  func.func @transform_2(%arg0: i32) -> (i32, i32) {
    %c0_i32 = arith.constant 0 : i32
    %c0_i32_0 = arith.constant 0 : i32
    %c0_i32_1 = arith.constant 0 : i32
    return %c0_i32, %c0_i32_0 : i32, i32
  }
  func.func @transform_3(%arg0: i32) -> (i32, i32) {
    %c0_i32 = arith.constant 0 : i32
    %c0_i32_0 = arith.constant 0 : i32
    return %arg0, %c0_i32 : i32, i32
  }
  func.func @transform_4(%arg0: i32) -> (i32, i32, i32) {
    %c0_i32 = arith.constant 0 : i32
    %c0_i32_0 = arith.constant 0 : i32
    %c0_i32_1 = arith.constant 0 : i32
    return %arg0, %c0_i32, %c0_i32_0 : i32, i32, i32
  }
}

</mosaic_0001>

<bundles_post_ra>
// kernel: tpu_custom_call.1
= control target key start
LH: loop header
LB: loop body
LE: loop exit
PB: predicated region body
PF: predicated region fallthrough
CT: control target
= control target key end

     0   :  { %10 = vsyncpa [#allocation3], 0  ;;  %s1354_s0 = inlined_call_operand.hbm [shape: f32[2,3,16,288], index: 0, kind: input, shape index: {}]   ;;  %s1355_s1 = inlined_call_operand.hbm [shape: f32[16,144], index: 1, kind: input, shape index: {}]   ;;  %s1356_s2 = inlined_call_operand.hbm [shape: f32[16,256], index: 2, kind: input, shape index: {}]   ;;  %s1357_s3 = inlined_call_operand.hbm [shape: f32[32,256], index: 3, kind: output, shape index: {0}]   ;;  %s1358_s4 = inlined_call_operand.vmem [shape: f32[2,16,2], index: 4, kind: output, shape index: {1}]  }
   0x1   :  { %12 = vsyncpa [#allocation3 + $0x1], 0 }
   0x2   :  { %13 = vsyncpa [#allocation6], 0 }
   0x3   :  { %14 = vsyncpa [#allocation4], 0 }
   0x4   :  { %16 = vsyncpa [#allocation4 + $0x1], 0  ;;  %s1088_s15 = smov 0   ;;  %s1090_s16 = smov 0  }
   0x5   :  { %s1092_s17 = smov 0   ;;  %s1094_s18 = smov 0  }
   0x6 LB: > { %s1109_s19 = sadd.s32 4294967295, %s1051_s18   ;;  %s698_s20 = sadd.s32 4294967294, %s1051_s18   ;;  %s1051_s18 = sphi %s1094_s18, %s1368_s18   ;;  %s1047_s17 = sphi %s1092_s17, %s1367_s17   ;;  %s1043_s16 = sphi %s1090_s16, %s1366_s16   ;;  %s1039_s15 = sphi %s1088_s15, %s1365_s15  }
   0x7   : > { %p42_p0 = scmp.ne.s32.totalorder %s1043_s16, %s1039_s15  ;;  %p43_p1 = scmp.eq.s32.totalorder %s1109_s19, 0 }
   0x8   : > { %p108_p2 = scmp.eq.s32.totalorder %s1109_s19, 1  ;;  %p114_p3 = scmp.eq.s32.totalorder %s698_s20, 1 }
   0x9   : > { %p1118_p4 = por %p43_p1, %p42_p0  ;;  %p699_p5 = scmp.ge.s32.totalorder %s1051_s18, 1 }
   0xa   : > { %p1123_p6 = por %p114_p3, %p42_p0  ;;  %p147_p7 = scmp.lt.s32.totalorder %s1051_s18, 3 }
   0xb   : > { %s158_s25 = sshll.u32 %s1355_s1, 4  ;;  %s1053_s27 = smov [#allocation5]   ;;  %s159_s25 = int_to_ptr.hbm [resolvable:$true] %s158_s25 }
   0xc   : > { %p1131_p8 = pnand %p699_p5, %p147_p7  ;;  %s160_s28 = sshll.u32 %s1053_s27, 4  ;;  %s161_s28 = int_to_ptr.vmem [resolvable:$true] %s160_s28 }
   0xd   : > { %s172_s5 = sshll.u32 %s1356_s2, 4  ;;  %s1054_s6 = smov 256   ;;  %s173_s5 = int_to_ptr.hbm [resolvable:$true] %s172_s5 }
   0xe   : > { %p738_p9 = pneg %p1131_p8  ;;  %s1055_s7 = smov 16  }
   0xf   : > { %s1056_s8 = smov [#allocation7]   ;;  %s1144_s10 = sadd.s32 1, %s1051_s18  }
  0x10   : > { %p739_p10 = pnand %p738_p9, %p43_p1  ;;  %s174_s9 = sshll.u32 %s1056_s8, 4  ;;  %s175_s9 = int_to_ptr.vmem [resolvable:$true] %s174_s9 }
  0x11   : > { %s29_s11 = sadd.s32 1, %s1047_s17  ;;  %s26_s12 = ssub.s32 %s1051_s18, %s1144_s10 }
  0x12   : > { %741 = dma.hbm_to_vmem [thread:$0]  (!%p739_p10), %s159_s25, 512, %s161_s28, [#allocation6], %s1054_s6, %s1054_s6, %s1055_s7  }
  0x13   : > { %744 = dma.hbm_to_vmem [thread:$0]  (!%p739_p10), %s173_s5, 512, %s175_s9, [#allocation6], %s1054_s6, %s1054_s6, %s1055_s7  }
  0x14   : > { %p36_p12 = scmp.ne.s32.totalorder %s1047_s17, %s1043_s16  ;;  %p27_p13 = scmp.eq.s32.totalorder %s26_s12, 0 }
  0x15   : > { %p37_p0 = scmp.eq.s32.totalorder %s1051_s18, 0  ;;  %p755_p5 = scmp.lt.s32.totalorder %s1051_s18, 2 }
  0x16   : > { %p1154_p3 = por %p108_p2, %p36_p12  ;;  %s188_s20 = sand.u32 1, %s1047_s17  }
  0x17   : > { %s1160_s14 = scalar_select %p27_p13, %s1047_s17, %s29_s11  }
  0x18   : > { %p38_p7 = por %p37_p0, %p36_p12  ;;  %s723_s23 = smul.u32 144, %s188_s20 }
  0x19   : > { %s724_s24 = smul.u32 144, %s1051_s18  ;;  %s189_s7 = scalar_lea.sflag [#allocation3], %s188_s20 }
  0x1a   : > { %p1164_p9 = pnand %p755_p5, %p38_p7  ;;  %s192_s30 = scalar_lea.vmem [#allocation2], %s723_s23 }
  0x1b   : > { %s197_s29 = scalar_lea.hbm %s1354_s0, %s724_s24  ;;  %s200_s5 = sshll.u32 %s192_s30, 4  ;;  %s201_s5 = int_to_ptr.vmem [resolvable:$true] %s200_s5 }
  0x1c   : > { %s198_s6 = sshll.u32 %s197_s29, 4  ;;  %p955_p10 = pneg %p1164_p9  ;;  %s199_s6 = int_to_ptr.hbm [resolvable:$true] %s198_s6 }
  0x1d   : > { %s951_s8 = sshra.s32 %s199_s6, 4  ;;  %s958_s27 = scalar_lea.hbm %s1354_s0, 288  ;;  %s952_s8 = int_to_ptr.hbm [resolvable:$true] %s951_s8 }
  0x1e   : > { %s953_s9 = scalar_lea.hbm %s952_s8, 144  ;;  %p959_p0 = scmp.lt.s32.totalorder %s952_s8, %s1354_s0 }
  0x1f   : > { %p954_p2 = scmp.ne.s32.totalorder %s952_s8, %s953_s9  ;;  %p960_p5 = scmp.lt.s32.totalorder %s958_s27, %s953_s9 }
  0x21   : > { %p956_p12 = pnand %p955_p10, %p954_p2  ;;  %p961_p7 = por %p960_p5, %p959_p0 }
  0x23   : > { %p957_p13 = pneg %p956_p12 }
  0x25   : > { %p962_p11 = pnand %p961_p7, %p957_p13 }
  0x27   : > { %965 = shalt.err (!%p962_p11)
}
  0x28   : > { %s1057_s20 = smov 384   ;;  %s1058_s23 = smov 24  }
  0x29   : > { %748 = dma.hbm_to_vmem [thread:$0]  (!%p1164_p9), %s199_s6, 2304, %s201_s5, %s189_s7, %s1057_s20, %s1057_s20, %s1058_s23  }
  0x2a   : > { %212 = sbr.rel (%p1131_p8) target bundleno = 483 (0x1e3), region = 32  ;;  %s1184_s29 = sand.u32 (!%p1131_p8), 1, %s1043_s16  }
  0x2b   : > { %s725_s30 = smul.u32 (!%p1131_p8), 144, %s1184_s29  ;;  %s215_s8 = scalar_lea.sflag (!%p1131_p8), [#allocation3], %s1184_s29 }
  0x2d   : > { %s1188_s9 = scalar_lea.vmem (!%p1131_p8), [#allocation2], %s725_s30 }
  0x2f   : > { %1026 = dma.done.wait (%p1118_p4), %s215_s8, 2304  }
  0x30   : > { %1028 = vsyncadd (%p1118_p4), %s215_s8, 4294964992 }
  0x31   : > { %1030 = dma.done.wait (%p43_p1), [#allocation6], 1024  }
  0x32   : > { %1032 = vsyncadd (%p43_p1), [#allocation6], 4294966272  ;;  %v1199_v0 = vld [vmem:[%s1188_s9 + $0x50] sm:$0xff]  ;;  %v276_v1 = vld [vmem:[%s1188_s9 + $0x58] sm:$0xff]  ;;  %s1059_s21 = smov 96   ;;  %s1060_s26 = smov 112  }
  0x33   : > { %v270_v2 = vld [vmem:[%s1188_s9 + $0x28] sm:$0xff]  ;;  %v801_v3 = vpack.i.bf16 %v276_v1, %v1199_v0  ;;  %v1205_v4 = vld [vmem:[%s1188_s9 + $0x20] sm:$0xff]  ;;  %v1210_v6 = vld [vmem:[%s1188_s9 + $0x30] sm:$0xff]  ;;  %vm374_vm0 = vcmask 785408   ;;  %vm301_vm1 = vcmask 916480   ;;  %vm431_vm2 = vcmask 130048  }
  0x34   : > { %v811_v5 = vpack.i.bf16 %v270_v2, %v1205_v4  ;;  %v1214_v7 = vld [vmem:[%s1188_s9 + $0x38] sm:$0xff]  ;;  %v273_v8 = vld [vmem:[%s1188_s9 + $0x40] sm:$0xff]  ;;  %v1218_v9 = vld [vmem:[%s1188_s9 + $0x48] sm:$0xff]  ;;  %s707_s25 = sshll.u32 %s1184_s29, 5  ;;  %s722_s5 = sshll.u32 %s1109_s19, 5 }
  0x35   : > { %802 = vrot.lane.b32.xlu0 %v801_v3, %s1059_s21  ;;  %v1221_v10 = vld [vmem:[%s1188_s9 + $0x8] sm:$0xff]  ;;  %v267_v11 = vld [vmem:[%s1188_s9 + $0x10] sm:$0xff]  ;;  %v821_v12 = vpack.i.bf16 %v1210_v6, %v1218_v9  ;;  %v806_v13 = vpack.i.bf16 %v273_v8, %v1214_v7  ;;  %v1230_v15 = vld [vmem:[%s1188_s9 + $0x80] sm:$0xff]  ;;  %s251_s6 = scalar_lea.vmem [#allocation8], %s707_s25  ;;  %s574_s12 = scalar_lea.hbm %s1357_s3, %s722_s5 }
  0x36   : > { %812 = vrot.lane.b32.xlu1 %v811_v5, %s1059_s21  ;;  %v816_v14 = vpack.i.bf16 %v267_v11, %v1221_v10  ;;  %v282_v16 = vld [vmem:[%s1188_s9 + $0x88] sm:$0xff]  ;;  %v279_v19 = vld [vmem:[%s1188_s9 + $0x70] sm:$0xff]  ;;  %v1241_v20 = vld [vmem:[%s1188_s9] sm:$0xff]  ;;  %s575_s27 = sshll.u32 %s251_s6, 4  ;;  %s577_s28 = sshll.u32 %s574_s12, 4  ;;  %s1317_s27 = int_to_ptr.vmem [resolvable:$true] %s575_s27  ;;  %s578_s28 = int_to_ptr.hbm [resolvable:$true] %s577_s28 }
  0x37   : > { %822 = vrot.lane.b32.xlu2 %v821_v12, %s1059_s21  ;;  %v826_v17 = vpack.i.bf16 %v282_v16, %v1230_v15  ;;  %v1237_v18 = vld [vmem:[%s1188_s9 + $0x68] sm:$0xff]  ;;  %v1244_v21 = vld [vmem:[%s1188_s9 + $0x18] sm:$0xff]  ;;  %v1254_v25 = vld [vmem:[%s1188_s9 + $0x60] sm:$0xff]  ;;  %s557_s24 = scalar_lea.sflag [#allocation4], %s1184_s29  ;;  %s995_s20 = sshra.s32 %s578_s28, 4  ;;  %s996_s20 = int_to_ptr.hbm [resolvable:$true] %s995_s20 }
  0x38   : > { %v831_v22 = vpack.i.bf16 %v279_v19, %v1237_v18  ;;  %v836_v23 = vpack.i.bf16 %v1241_v20, %v1244_v21  ;;  %v1251_v24 = vld [vmem:[%s1188_s9 + $0x78] sm:$0xff]  ;;  %v856_v27 = vpack.i.bf16 %v1254_v25, %v270_v2  ;;  %s997_s23 = scalar_lea.hbm %s996_s20, 32  ;;  %s1001_s9 = scalar_lea.hbm %s1357_s3, 64 }
  0x39   : > { %v851_v26 = vpack.i.bf16 %v1205_v4, %v1251_v24  ;;  %v886_v28 = vpack.i.bf16 %v1254_v25, %v1251_v24  ;;  %p998_p1 = scmp.ne.s32.totalorder %s996_s20, %s997_s23  ;;  %p1002_p11 = scmp.lt.s32.totalorder %s996_s20, %s1357_s3 }
  0x3a   : > { %p1003_p9 = scmp.lt.s32.totalorder %s1001_s9, %s997_s23 }
  0x3b   : > { %p999_p4 = pnand %p998_p1, %p1154_p3 }
  0x3c   : > { %p1004_p2 = por %p1003_p9, %p1002_p11 }
  0x3d   : > { %807 = vrot.lane.b32.xlu0 %v806_v13, %s1059_s21  ;;  %p1000_p8 = pneg %p999_p4 }
  0x3e   : > { %817 = vrot.lane.b32.xlu1 %v816_v14, %s1059_s21 }
  0x3f   : > { %827 = vrot.lane.b32.xlu2 %v826_v17, %s1060_s26  ;;  %p1005_p10 = pnand %p1004_p2, %p1000_p8 }
  0x45   : > { %832 = vrot.lane.b32.xlu0 %v831_v22, %s1060_s26 }
  0x46   : > { %837 = vrot.lane.b32.xlu1 %v836_v23, %s1059_s21 }
  0x47   : > { %842 = vrot.lane.b32.xlu2 %v801_v3, %s1060_s26 }
  0x4d   : > { %847 = vrot.lane.b32.xlu0 %v806_v13, %s1060_s26 }
  0x4e   : > { %852 = vrot.lane.b32.xlu1 %v851_v26, %s1060_s26 }
  0x4f   : > { %857 = vrot.lane.b32.xlu2 %v856_v27, %s1060_s26 }
  0x55   : > { %862 = vrot.lane.b32.xlu0 %v816_v14, %s1060_s26 }
  0x56   : > { %867 = vrot.lane.b32.xlu1 %v821_v12, %s1060_s26 }
  0x57   : > { %872 = vrot.lane.b32.xlu2 %v836_v23, %s1060_s26 }
  0x5d   : > { %877 = vrot.lane.b32.xlu0 %v826_v17, %s1059_s21 }
  0x5e   : > { %882 = vrot.lane.b32.xlu1 %v831_v22, %s1059_s21 }
  0x5f   : > { %887 = vrot.lane.b32.xlu2 %v886_v28, %s1059_s21 }
  0x91   : > { %v823_v29 = vpop.permute.xlu2 %822 }
  0x92   : > { %v824_v31 = vunpack.i.l.bf16 %v823_v29  ;;  %v825_v38 = vunpack.i.h.bf16 %v823_v29 }
  0x99   : > { %v1264_v30 = vpop.permute.xlu2 %827 }
  0x9a   : > { %v830_v50 = vunpack.i.h.bf16 %v1264_v30  ;;  %v829_v51 = vunpack.i.l.bf16 %v1264_v30 }
  0x9c   : > { %v357_v60 = vsel %vm301_vm1, %v829_v51, %v830_v50 }
  0xa1   : > { %v1268_v40 = vpop.permute.xlu2 %842 }
  0xa2   : > { %v845_v53 = vunpack.i.h.bf16 %v1268_v40  ;;  %v844_v54 = vunpack.i.l.bf16 %v1268_v40 }
  0xa4   : > { %v331_v2 = vsel %vm301_vm1, %v844_v54, %v845_v53  ;;  %v424_v53 = vld [vmem:[#allocation5 + $0x8] sm:$0xff] }
  0xa7   : > { %v803_v32 = vpop.permute.xlu0 %802 }
  0xa8   : > { %v805_v33 = vunpack.i.h.bf16 %v803_v32  ;;  %v804_v34 = vunpack.i.l.bf16 %v803_v32  ;;  %v813_v35 = vpop.permute.xlu1 %812 }
  0xa9   : > { %v815_v41 = vunpack.i.h.bf16 %v813_v35  ;;  %v814_v42 = vunpack.i.l.bf16 %v813_v35  ;;  %v858_v61 = vpop.permute.xlu2 %857 }
  0xaa   : > { %v397_v36 = vsel %vm374_vm0, %v824_v31, %v804_v34  ;;  %v398_v37 = vsel %vm374_vm0, %v804_v34, %v805_v33  ;;  %v859_v11 = vunpack.i.l.bf16 %v858_v61  ;;  %v860_v16 = vunpack.i.h.bf16 %v858_v61  ;;  %v429_v61 = vld [vmem:[#allocation7 + $0x10] sm:$0xff] }
  0xab   : > { %438 = vmatpush.msra.mxu0 %v397_v36  ;;  %484 = vmatpush.msra.mxu2 %v398_v37  ;;  %v378_v52 = vsel %vm374_vm0, %v814_v42, %v815_v41 }
  0xaf   : > { %v808_v39 = vpop.permute.xlu0 %807 }
  0xb0   : > { %v810_v43 = vunpack.i.h.bf16 %v808_v39  ;;  %v809_v44 = vunpack.i.l.bf16 %v808_v39  ;;  %v818_v45 = vpop.permute.xlu1 %817 }
  0xb1   : > { %v820_v46 = vunpack.i.h.bf16 %v818_v45  ;;  %v819_v47 = vunpack.i.l.bf16 %v818_v45  ;;  %v873_v23 = vpop.permute.xlu2 %872 }
  0xb2   : > { %v395_v48 = vsel %vm374_vm0, %v825_v38, %v809_v44  ;;  %v396_v49 = vsel %vm374_vm0, %v809_v44, %v810_v43  ;;  %v874_v36 = vunpack.i.l.bf16 %v873_v23  ;;  %v875_v39 = vunpack.i.h.bf16 %v873_v23 }
  0xb3   : > { %439 = vmatpush.msra.mxu0 %v395_v48  ;;  %485 = vmatpush.msra.mxu2 %v396_v49  ;;  %v376_v55 = vsel %vm374_vm0, %v819_v47, %v820_v46 }
  0xb5   : > { %486 = vmatpush.msra.mxu2 %v378_v52 }
  0xb7   : > { %v833_v56 = vpop.permute.xlu0 %832  ;;  %487 = vmatpush.msra.mxu2 %v376_v55 }
  0xb8   : > { %v835_v57 = vunpack.i.h.bf16 %v833_v56  ;;  %v834_v58 = vunpack.i.l.bf16 %v833_v56  ;;  %v838_v59 = vpop.permute.xlu1 %837 }
  0xb9   : > { %v840_v62 = vunpack.i.h.bf16 %v838_v59  ;;  %v839_v63 = vunpack.i.l.bf16 %v838_v59  ;;  %488 = vmatpush.msra.mxu2 %v357_v60  ;;  %v888_v38 = vpop.permute.xlu2 %887  ;;  %v430_v59 = vld [vmem:[#allocation7 + $0x18] sm:$0xff] }
  0xba   : > { %v355_v1 = vsel %vm301_vm1, %v834_v58, %v835_v57  ;;  %v354_v28 = vsel %vm301_vm1, %v860_v16, %v834_v58  ;;  %v889_v41 = vunpack.i.l.bf16 %v888_v38  ;;  %v890_v44 = vunpack.i.h.bf16 %v888_v38 }
  0xbb   : > { %v377_v3 = vsel %vm374_vm0, %v839_v63, %v814_v42  ;;  %489 = vmatpush.msra.mxu2 %v355_v1  ;;  %v375_v5 = vsel %vm374_vm0, %v840_v62, %v819_v47 }
  0xbc   : > { %440 = vmatpush.msra.mxu0 %v377_v3 }
  0xbd   : > { %490 = vmatpush.msra.mxu2 %v331_v2 }
  0xbe   : > { %441 = vmatpush.msra.mxu0 %v375_v5 }
  0xbf   : > { %v848_v8 = vpop.permute.xlu0 %847 }
  0xc0   : > { %v850_v12 = vunpack.i.h.bf16 %v848_v8  ;;  %v849_v13 = vunpack.i.l.bf16 %v848_v8  ;;  %v853_v14 = vpop.permute.xlu1 %852 }
  0xc1   : > { %v855_v17 = vunpack.i.h.bf16 %v853_v14  ;;  %v854_v19 = vunpack.i.l.bf16 %v853_v14 }
  0xc2   : > { %v329_v22 = vsel %vm301_vm1, %v849_v13, %v850_v12 }
  0xc3   : > { %v356_v26 = vsel %vm301_vm1, %v854_v19, %v829_v51  ;;  %491 = vmatpush.msra.mxu2 %v329_v22  ;;  %v305_v27 = vsel %vm301_vm1, %v855_v17, %v859_v11  ;;  %v304_v42 = vsel %vm301_vm1, %v874_v36, %v855_v17 }
  0xc4   : > { %442 = vmatpush.msra.mxu0 %v356_v26 }
  0xc5   : > { %492 = vmatpush.msra.mxu2 %v305_v27 }
  0xc6   : > { %443 = vmatpush.msra.mxu0 %v354_v28 }
  0xc7   : > { %v863_v29 = vpop.permute.xlu0 %862 }
  0xc8   : > { %v865_v30 = vunpack.i.h.bf16 %v863_v29  ;;  %v864_v31 = vunpack.i.l.bf16 %v863_v29  ;;  %v868_v32 = vpop.permute.xlu1 %867 }
  0xc9   : > { %v870_v33 = vunpack.i.h.bf16 %v868_v32  ;;  %v869_v34 = vunpack.i.l.bf16 %v868_v32 }
  0xca   : > { %v303_v35 = vsel %vm301_vm1, %v864_v31, %v865_v30  ;;  %v302_v48 = vsel %vm301_vm1, %v875_v39, %v864_v31 }
  0xcb   : > { %v330_v37 = vsel %vm301_vm1, %v869_v34, %v844_v54  ;;  %493 = vmatpush.msra.mxu2 %v303_v35  ;;  %v328_v40 = vsel %vm301_vm1, %v870_v33, %v849_v13 }
  0xcc   : > { %444 = vmatpush.msra.mxu0 %v330_v37 }
  0xcd   : > { %494 = vmatpush.msra.mxu2 %v1230_v15 }
  0xce   : > { %445 = vmatpush.msra.mxu0 %v328_v40 }
  0xcf   : > { %495 = vmatpush.msra.mxu2 %v1237_v18  ;;  %v878_v43 = vpop.permute.xlu0 %877 }
  0xd0   : > { %446 = vmatpush.msra.mxu0 %v304_v42  ;;  %v880_v45 = vunpack.i.h.bf16 %v878_v43  ;;  %v879_v46 = vunpack.i.l.bf16 %v878_v43  ;;  %v883_v47 = vpop.permute.xlu1 %882 }
  0xd1   : > { %496 = vmatpush.msra.mxu2 %v1199_v0  ;;  %v885_v49 = vunpack.i.h.bf16 %v883_v47  ;;  %v884_v50 = vunpack.i.l.bf16 %v883_v47  ;;  %v423_v0 = vld [vmem:[#allocation5] sm:$0xff] }
  0xd2   : > { %447 = vmatpush.msra.mxu0 %v302_v48  ;;  %v417_v15 = vsel %vm374_vm0, %v889_v41, %v879_v46  ;;  %v418_v51 = vsel %vm374_vm0, %v879_v46, %v880_v45 }
  0xd3   : > { %497 = vmatpush.msra.mxu2 %v1214_v7  ;;  %475 = vmatpush.msra.mxu1 %v417_v15  ;;  %v415_v18 = vsel %vm374_vm0, %v890_v44, %v884_v50  ;;  %v416_v52 = vsel %vm374_vm0, %v884_v50, %v885_v49  ;;  %v425_v7 = vld [vmem:[#allocation5 + $0x10] sm:$0xff] }
  0xd4   : > { %448 = vmatpush.msra.mxu0 %v1251_v24  ;;  %521 = vmatpush.msra.mxu3 %v418_v51 }
  0xd5   : > { %498 = vmatpush.msra.mxu2 %v1205_v4  ;;  %476 = vmatpush.msra.mxu1 %v415_v18  ;;  %v426_v4 = vld [vmem:[#allocation5 + $0x18] sm:$0xff] }
  0xd6   : > { %449 = vmatpush.msra.mxu0 %v1254_v25  ;;  %522 = vmatpush.msra.mxu3 %v416_v52 }
  0xd7   : > { %499 = vmatpush.msra.mxu2 %v1221_v10  ;;  %712 = vmatmul.msk.f32.vlgmr.msra.gmra.mxu3 %vm431_vm2, %v424_v53  ;;  %v427_v10 = vld [vmem:[#allocation7] sm:$0xff] }
  0xd8   : > { %450 = vmatpush.msra.mxu0 %v1218_v9  ;;  %500 = vmatmul.f32.vlgmr.msra.gmra.mxu2 %v423_v0  ;;  %v428_v9 = vld [vmem:[#allocation7 + $0x8] sm:$0xff] }
  0xd9   : > { %710 = vmatmul.msk.f32.vlgmr.msra.gmra.mxu1 %vm431_vm2, %v424_v53 }
  0xda   : > { %451 = vmatpush.msra.mxu0 %v1210_v6 }
  0xdc   : > { %452 = vmatpush.msra.mxu0 %v1244_v21 }
  0xde   : > { %453 = vmatpush.msra.mxu0 %v1241_v20 }
  0xdf   : > { %454 = vmatmul.f32.vlgmr.msra.gmra.mxu0 %v423_v0  ;;  %713 = vmatmul.msk.f32.gmra.mxu3 %vm431_vm2, %v426_v4 }
  0xe0   : > { %503 = vmatmul.f32.gmra.mxu2 %v425_v7 }
  0xe1   : > { %711 = vmatmul.msk.f32.gmra.mxu1 %vm431_vm2, %v426_v4 }
  0xe7   : > { %457 = vmatmul.f32.gmra.mxu0 %v425_v7 }
 0x156   : > { %v478_v24 = vpop.f32.mrf.mxu1 }
 0x15a   : > { %v524_v25 = vpop.f32.mrf.mxu3 }
 0x15b   : > { %v501_v6 = vpop.f32.mrf.mxu2 }
 0x15c   : > { %v455_v54 = vpop.f32.mrf.mxu0  ;;  %v502_v21 = vadd.f32 %v501_v6, %v428_v9 }
 0x15d   : > { %v456_v55 = vadd.f32 %v455_v54, %v427_v10 }
 0x15e   : > { %v525_v56 = vadd.f32 %v524_v25, %v502_v21  ;;  %v481_v5 = vpop.f32.mrf.mxu1 }
 0x15f   : > { %v479_v20 = vadd.f32 %v478_v24, %v456_v55 }
 0x160   : > { %553 = vst [vmem:[%s251_s6 + $0x8] sm:$0xff] %v525_v56  ;;  %v537_v57 = vmul.f32 %v525_v56, %v525_v56 }
 0x161   : > { %552 = vst [vmem:[%s251_s6] sm:$0xff] %v479_v20  ;;  %v530_v58 = vadd.f32 %v525_v56, %v479_v20  ;;  %v536_v60 = vmul.f32 %v479_v20, %v479_v20 }
 0x162   : > { %v527_v1 = vpop.f32.mrf.mxu3 }
 0x163   : > { %531 = vadd.xlane.f32.xlu0 %v530_v58  ;;  %v504_v62 = vpop.f32.mrf.mxu2  ;;  %v540_v63 = vadd.f32 %v537_v57, %v536_v60 }
 0x164   : > { %v458_v2 = vpop.f32.mrf.mxu0  ;;  %v505_v3 = vadd.f32 %v504_v62, %v430_v59 }
 0x165   : > { %v459_v8 = vadd.f32 %v458_v2, %v429_v61  ;;  %541 = vadd.xlane.f32.xlu2 %v540_v63 }
 0x166   : > { %v528_v11 = vadd.f32 %v527_v1, %v505_v3 }
 0x167   : > { %v482_v12 = vadd.f32 %v481_v5, %v459_v8 }
 0x168   : > { %555 = vst [vmem:[%s251_s6 + $0x18] sm:$0xff] %v528_v11  ;;  %v539_v13 = vmul.f32 %v528_v11, %v528_v11 }
 0x169   : > { %554 = vst [vmem:[%s251_s6 + $0x10] sm:$0xff] %v482_v12  ;;  %v533_v14 = vadd.f32 %v528_v11, %v482_v12  ;;  %v538_v16 = vmul.f32 %v482_v12, %v482_v12 }
 0x16a   : > { %1008 = shalt.err (!%p1005_p10)
}
 0x16b   : > { %s1061_s29 = smov 256   ;;  %s1062_s25 = smov 16   ;;  %534 = vadd.xlane.f32.xlu1 %v533_v14  ;;  %v543_v17 = vadd.f32 %v539_v13, %v538_v16  ;;  %vm546_vm3 = vcmask 7168   ;;  %vm549_vm4 = vcmask 15360  }
 0x16c   : > { %736 = dma.vmem_to_hbm [thread:$0]  (%p1154_p3), %s1317_s27, 512, %s578_s28, %s557_s24, %s1061_s29, %s1061_s29, %s1062_s25  }
 0x16d   : > { %544 = vadd.xlane.f32.xlu2 %v543_v17  ;;  %p260_p12 = scmp.lt.s32.totalorder %s1109_s19, 1 }
 0x16f   : > { %s1370_s19 = smov (!%p260_p12, %s1109_s19), 1 }
 0x170   : > { %s720_s5 = sshll.u32 %s1370_s19, 4 }
 0x171   : > { %s264_s11 = scalar_lea.vmem %s1358_s4, %s720_s5 }
 0x1d6   : > { %v532_v19 = vpop.xlane.xlu0 %531 }
 0x1d8   : > { %v542_v22 = vpop.xlane.xlu2 %541 }
 0x1d9   : > { %v547_v23 = vsel %vm546_vm3, %v532_v19, %v542_v22 }
 0x1da   : > { %550 = vst.msk [vmem:[%s264_s11] sm:$0xff] %vm549_vm4, %v547_v23 }
 0x1de   : > { %v535_v26 = vpop.xlane.xlu1 %534 }
 0x1e0   : > { %v545_v27 = vpop.xlane.xlu2 %544 }
 0x1e1   : > { %v548_v28 = vsel %vm546_vm3, %v535_v26, %v545_v27 }
 0x1e2   : > { %551 = vst.msk [vmem:[%s264_s11 + $0x8] sm:$0xff] %vm549_vm4, %v548_v28 }
 0x1e3 PF: > { %s595_s13 = sand.u32 1, %s1039_s15   ;;  %p1364_p3 = scmp.ge.s32.totalorder %s1051_s18, 2 }
 0x1e4   : > { %s596_s19 = scalar_lea.sflag [#allocation4], %s595_s13 }
 0x1e5   : > { %p750_p13 = pnand %p1364_p3, %p1123_p6 }
 0x1e7   : > { %p751_p0 = pneg %p750_p13 }
 0x1e9   : > { %1034 = dma.done.wait (%p751_p0), %s596_s19, 512  }
 0x1ea   : > { %1036 = vsyncadd (%p751_p0), %s596_s19, 4294966784  ;;  %p19_p5 = scmp.ge.s32.totalorder %s1144_s10, 4   ;;  %s1365_s15 = smov %s1043_s16 }
 0x1eb   : > { %s1366_s16 = smov %s1047_s17  ;;  %s1367_s17 = smov %s1160_s14 }
 0x1ec   : > { %s1368_s18 = smov %s1144_s10  ;;  %21 = sbr.rel (!%p19_p5) target bundleno = 6 (0x6), region = 97 }
 0x1f1   :  { %610 = vsyncpa [#allocation3], 1 }
 0x1f2   :  { %612 = vsyncpa [#allocation3 + $0x1], 1 }
 0x1f3   :  { %613 = vsyncpa [#allocation6], 1 }
 0x1f4   :  { %614 = vsyncpa [#allocation4], 1 }
 0x1f5   :  { %616 = vsyncpa [#allocation4 + $0x1], 1 }

</bundles_post_ra>
